<compile_context>
chip_gen: v7x
topology: tpu7x:2x2x1
jax: 0.10.0
libtpu: 0.0.40
codegen_flags: <defaults>
</compile_context>

<pallas_src>
from functools import partial

import jax
import jax.numpy as jnp
from jax.experimental import pallas as pl
from jax.experimental.pallas import tpu as pltpu


# ---------------------------------------------------------------------------
# Pallas kernel: elementwise rotary rotation, lane axis = H*D.
# ---------------------------------------------------------------------------
def _rope_kernel(x_ref, cos_ref, sin_e_ref, sin_o_ref, o_ref):
    # x_ref/o_ref : (Bt, Tt, L)   with L = H*D
    # cos_ref     : (Tt, L)  [c0,c0,c1,c1,...]        (f32)
    # sin_e_ref   : (Tt, L)  [-s0,0,-s1,0,...]        (f32)
    # sin_o_ref   : (Tt, L)  [0,s0,0,s1,...]          (f32)
    x = x_ref[...].astype(jnp.float32)
    L = x.shape[-1]
    c = cos_ref[...][None]          # (1, Tt, L) -> broadcast over Bt
    se = sin_e_ref[...][None]
    so = sin_o_ref[...][None]

    # Lane-neighbour partners via XLU rotation (idle slot in this mem-bound
    # kernel).  Wraparound across head boundaries lands on zero table entries.
    x_next = pltpu.roll(x, L - 1, 2)   # y[l] = x[l+1]  (partner for even lanes)
    x_prev = pltpu.roll(x, 1, 2)       # y[l] = x[l-1]  (partner for odd lanes)

    # out[2k]   = xe*c - xo*s
    # out[2k+1] = xo*c + xe*s
    o_ref[...] = (x * c + x_next * se + x_prev * so).astype(o_ref.dtype)


# ---------------------------------------------------------------------------
# Parameter setup: pre-masked cos/sin tables, shape (max_ctx, n_rep*dim).
# Build once with n_rep = prod(dup_dims) to avoid any per-call table work.
# ---------------------------------------------------------------------------
def compute_rope_tables(dim: int, max_ctx_len: int, theta: float = 10000.0,
                        n_rep: int = 1):
    assert dim % 2 == 0, "Model dimension should be a multiple of two"
    freqs = theta ** (-jnp.arange(0, dim, 2, dtype=jnp.float32) / dim)  # (D/2,)
    m = jnp.arange(max_ctx_len, dtype=jnp.float32)                      # (Tm,)
    ang = jnp.outer(m, freqs)                                           # (Tm, D/2)
    c, s = jnp.cos(ang), jnp.sin(ang)
    z = jnp.zeros_like(s)
    cos_i = jnp.repeat(c, 2, axis=-1)                                   # c0,c0,c1,c1,...
    sin_even = jnp.stack([-s, z], axis=-1).reshape(max_ctx_len, dim)    # -s0,0,-s1,0,...
    sin_odd = jnp.stack([z, s], axis=-1).reshape(max_ctx_len, dim)      # 0,s0,0,s1,...
    if n_rep > 1:
        cos_i = jnp.tile(cos_i, (1, n_rep))
        sin_even = jnp.tile(sin_even, (1, n_rep))
        sin_odd = jnp.tile(sin_odd, (1, n_rep))
    return cos_i, sin_even, sin_odd


# ---------------------------------------------------------------------------
# Wrapper: contiguous reshape + pallas_call (single read + write of x).
# ---------------------------------------------------------------------------
@partial(jax.jit, static_argnames=("donate_x",))
def rotary_embeddings(x, cos_tab, sin_even_tab, sin_odd_tab, cur_pos=0,
                      donate_x=False):
    """x: (B, T, *dup_dims, D). Returns tensor of same shape/dtype.

    Pass cur_pos as a jnp.int32 scalar so decode positions don't recompile.
    """
    orig_shape = x.shape
    B, T, D = x.shape[0], x.shape[1], x.shape[-1]
    H = 1
    for dd in x.shape[2:-1]:
        H *= dd
    L = H * D
    x3 = x.reshape(B, T, L)  # contiguous reshape: free

    # Tiny table slice for rows [cur_pos, cur_pos + T); cur_pos is traced.
    cos = jax.lax.dynamic_slice_in_dim(cos_tab, cur_pos, T, axis=0)
    se = jax.lax.dynamic_slice_in_dim(sin_even_tab, cur_pos, T, axis=0)
    so = jax.lax.dynamic_slice_in_dim(sin_odd_tab, cur_pos, T, axis=0)
    tabw = cos_tab.shape[-1]
    if tabw == L:
        pass
    elif tabw == D and H > 1:
        # Fallback: tile per call (prefer compute_rope_tables(..., n_rep=H)).
        cos, se, so = (jnp.tile(t, (1, H)) for t in (cos, se, so))
    else:
        raise ValueError(f"table width {tabw} incompatible with D={D}, H={H}")

    # ------------------------------------------------------------------
    # Block sizing: ~4 MiB of x per block; Tt a multiple of 8 (or == T).
    # ------------------------------------------------------------------
    itemsize = jnp.dtype(x.dtype).itemsize
    row_bytes = L * itemsize
    target_bytes = 4 * 1024 * 1024
    rows = max(1, target_bytes // row_bytes)
    if T <= rows:
        Tt = T
        Bt = min(B, max(1, rows // T))
    else:
        Tt = min(T, max(8, (rows // 8) * 8))
        Bt = 1

    # Megacore (v7x): make sure there is something to split when worth it.
    if Bt >= B and Tt >= T and B * T * row_bytes > (2 << 20):
        if B >= 2:
            Bt = (B + 1) // 2
        elif T >= 16:
            Tt = ((T // 2 + 7) // 8) * 8

    grid = (pl.cdiv(B, Bt), pl.cdiv(T, Tt))
    x_spec = pl.BlockSpec((Bt, Tt, L), lambda i, j: (i, j, 0))
    tab_spec = pl.BlockSpec((Tt, L), lambda i, j: (j, 0))

    extra = {}
    if donate_x:
        extra["input_output_aliases"] = {0: 0}

    out = pl.pallas_call(
        _rope_kernel,
        out_shape=jax.ShapeDtypeStruct((B, T, L), x.dtype),
        grid_spec=pltpu.PrefetchScalarGridSpec(
            num_scalar_prefetch=0,
            grid=grid,
            in_specs=[x_spec, tab_spec, tab_spec, tab_spec],
            out_specs=x_spec,
        ),
        compiler_params=pltpu.CompilerParams(
            dimension_semantics=("parallel", "parallel"),
            vmem_limit_bytes=48 * 1024 * 1024,
        ),
        cost_estimate=pl.CostEstimate(
            flops=5 * x.size,
            transcendentals=0,
            bytes_accessed=2 * x.size * itemsize + 3 * T * L * 4,
        ),
        **extra,
    )(x3, cos, se, so)

    return out.reshape(orig_shape)


# ---------------------------------------------------------------------------
# Pure-JAX reference (mirrors the torch complex-multiply semantics).
# ---------------------------------------------------------------------------
def rotary_reference(x, theta=10000.0, cur_pos=0):
    B, T, D = x.shape[0], x.shape[1], x.shape[-1]
    Dh = D // 2
    freqs = theta ** (-jnp.arange(0, D, 2, dtype=jnp.float32) / D)
    m = jnp.arange(cur_pos, cur_pos + T, dtype=jnp.float32)
    ang = jnp.outer(m, freqs)                   # (T, Dh)
    c, s = jnp.cos(ang), jnp.sin(ang)
    xr = x.astype(jnp.float32).reshape(*x.shape[:-1], Dh, 2)
    xe, xo = xr[..., 0], xr[..., 1]
    bshape = (1, T) + (1,) * (x.ndim - 3) + (Dh,)
    c = c.reshape(bshape)
    s = s.reshape(bshape)
    oe = xe * c - xo * s
    oo = xe * s + xo * c
    return jnp.stack([oe, oo], axis=-1).reshape(x.shape).astype(x.dtype)


if __name__ == "__main__":
    # Small shapes: batch=2, ctx_len=8, heads=4, dim=32 (lane width H*D = 128)
    B, T, H, D = 2, 8, 4, 32
    MAX_CTX = 16
    THETA = 10000.0

    key = jax.random.PRNGKey(0)
    x = jax.random.normal(key, (B, T, H, D), dtype=jnp.float32)

    # Tables pre-tiled to H*D at init time (no per-call table work).
    cos_tab, sin_even_tab, sin_odd_tab = compute_rope_tables(
        D, MAX_CTX, THETA, n_rep=H)

    # cur_pos = 0
    out = rotary_embeddings(x, cos_tab, sin_even_tab, sin_odd_tab, jnp.int32(0))
    out = jax.block_until_ready(out)
    ref = rotary_reference(x, THETA, 0)
    assert out.shape == x.shape and out.dtype == x.dtype
    assert jnp.allclose(out, ref, atol=1e-5, rtol=1e-5), "mismatch (cur_pos=0)"

    # cur_pos = 3 (same compilation: cur_pos is traced)
    out3 = rotary_embeddings(x, cos_tab, sin_even_tab, sin_odd_tab, jnp.int32(3))
    out3 = jax.block_until_ready(out3)
    ref3 = rotary_reference(x, THETA, 3)
    assert jnp.allclose(out3, ref3, atol=1e-5, rtol=1e-5), "mismatch (cur_pos=3)"

    print("KERNEL_OK")
</pallas_src>

<mosaic_0001>
module attributes {stable_mosaic.version = 11 : i64} {
  func.func @_rope_kernel(%arg0: i32, %arg1: i32, %arg2: memref<2x8x128xf32, #tpu.memory_space<vmem>>, %arg3: memref<8x128xf32, #tpu.memory_space<vmem>>, %arg4: memref<8x128xf32, #tpu.memory_space<vmem>>, %arg5: memref<8x128xf32, #tpu.memory_space<vmem>>, %arg6: memref<2x8x128xf32, #tpu.memory_space<vmem>>) attributes {dimension_semantics = [#tpu.dimension_semantics<parallel>, #tpu.dimension_semantics<parallel>], iteration_bounds = array<i64: 1, 1>, scalar_prefetch = 0 : i64, scratch_operands = 0 : i64, tpu.core_type = #tpu.core_type<tc>, window_params = [{transform_indices = @transform_0, window_bounds = array<i64: 2, 8, 128>}, {transform_indices = @transform_1, window_bounds = array<i64: 8, 128>}, {transform_indices = @transform_2, window_bounds = array<i64: 8, 128>}, {transform_indices = @transform_3, window_bounds = array<i64: 8, 128>}, {transform_indices = @transform_4, window_bounds = array<i64: 2, 8, 128>}]} {
    %c0 = arith.constant 0 : index
    %c0_0 = arith.constant 0 : index
    %c0_1 = arith.constant 0 : index
    %0 = vector.load %arg2[%c0, %c0_0, %c0_1] : memref<2x8x128xf32, #tpu.memory_space<vmem>>, vector<2x8x128xf32>
    %c0_2 = arith.constant 0 : index
    %c0_3 = arith.constant 0 : index
    %1 = vector.load %arg3[%c0_2, %c0_3] : memref<8x128xf32, #tpu.memory_space<vmem>>, vector<8x128xf32>
    %2 = vector.shape_cast %1 : vector<8x128xf32> to vector<1x8x128xf32>
    %c0_4 = arith.constant 0 : index
    %c0_5 = arith.constant 0 : index
    %3 = vector.load %arg4[%c0_4, %c0_5] : memref<8x128xf32, #tpu.memory_space<vmem>>, vector<8x128xf32>
    %4 = vector.shape_cast %3 : vector<8x128xf32> to vector<1x8x128xf32>
    %c0_6 = arith.constant 0 : index
    %c0_7 = arith.constant 0 : index
    %5 = vector.load %arg5[%c0_6, %c0_7] : memref<8x128xf32, #tpu.memory_space<vmem>>, vector<8x128xf32>
    %6 = vector.shape_cast %5 : vector<8x128xf32> to vector<1x8x128xf32>
    %c127_i32 = arith.constant 127 : i32
    %7 = tpu.dynamic_rotate %0 by %c127_i32 dim 2 : vector<2x8x128xf32>, i32 -> vector<2x8x128xf32>
    %c1_i32 = arith.constant 1 : i32
    %8 = tpu.dynamic_rotate %0 by %c1_i32 dim 2 : vector<2x8x128xf32>, i32 -> vector<2x8x128xf32>
    %9 = vector.broadcast %2 : vector<1x8x128xf32> to vector<2x8x128xf32>
    %10 = arith.mulf %0, %9 : vector<2x8x128xf32>
    %11 = vector.broadcast %4 : vector<1x8x128xf32> to vector<2x8x128xf32>
    %12 = arith.mulf %7, %11 : vector<2x8x128xf32>
    %13 = arith.addf %10, %12 : vector<2x8x128xf32>
    %14 = vector.broadcast %6 : vector<1x8x128xf32> to vector<2x8x128xf32>
    %15 = arith.mulf %8, %14 : vector<2x8x128xf32>
    %16 = arith.addf %13, %15 : vector<2x8x128xf32>
    %c0_8 = arith.constant 0 : index
    %c0_9 = arith.constant 0 : index
    %c0_10 = arith.constant 0 : index
    %17 = vector.load %arg6[%c0_8, %c0_9, %c0_10] : memref<2x8x128xf32, #tpu.memory_space<vmem>>, vector<2x8x128xf32>
    tpu.vector_store %arg6[%c0_8, %c0_9, %c0_10], %16 {strides = array<i32>} : memref<2x8x128xf32, #tpu.memory_space<vmem>>, vector<2x8x128xf32>,
    return
  }
  func.func @transform_0(%arg0: i32, %arg1: i32) -> (i32, i32, i32) {
    %c0_i32 = arith.constant 0 : i32
    %c0_i32_0 = arith.constant 0 : i32
    return %arg0, %arg1, %c0_i32 : i32, i32, i32
  }
  func.func @transform_1(%arg0: i32, %arg1: i32) -> (i32, i32) {
    %c0_i32 = arith.constant 0 : i32
    %c0_i32_0 = arith.constant 0 : i32
    return %arg1, %c0_i32 : i32, i32
  }
  func.func @transform_2(%arg0: i32, %arg1: i32) -> (i32, i32) {
    %c0_i32 = arith.constant 0 : i32
    %c0_i32_0 = arith.constant 0 : i32
    return %arg1, %c0_i32 : i32, i32
  }
  func.func @transform_3(%arg0: i32, %arg1: i32) -> (i32, i32) {
    %c0_i32 = arith.constant 0 : i32
    %c0_i32_0 = arith.constant 0 : i32
    return %arg1, %c0_i32 : i32, i32
  }
  func.func @transform_4(%arg0: i32, %arg1: i32) -> (i32, i32, i32) {
    %c0_i32 = arith.constant 0 : i32
    %c0_i32_0 = arith.constant 0 : i32
    return %arg0, %arg1, %c0_i32 : i32, i32, i32
  }
}

</mosaic_0001>

<bundles_post_ra>
// kernel: rotary_embeddings.1
= control target key start
LH: loop header
LB: loop body
LE: loop exit
PB: predicated region body
PF: predicated region fallthrough
CT: control target
= control target key end

     0   :  { %s48_s17 = smov 127   ;;  %s49_s18 = smov 1   ;;  %s96_s0 = inlined_call_operand.vmem [shape: f32[2,8,128], index: 0, kind: input, shape index: {}]   ;;  %s97_s1 = inlined_call_operand.vmem [shape: f32[8,128], index: 1, kind: input, shape index: {}]   ;;  %s98_s2 = inlined_call_operand.vmem [shape: f32[8,128], index: 2, kind: input, shape index: {}]   ;;  %s99_s3 = inlined_call_operand.vmem [shape: f32[8,128], index: 3, kind: input, shape index: {}]   ;;  %s100_s4 = inlined_call_operand.vmem [shape: f32[2,8,128], index: 4, kind: output, shape index: {}]  }
   0x1   :  { %v17_v0 = vld [vmem:[%s96_s0] sm:$0xff]  ;;  %v18_v1 = vld [vmem:[%s96_s0 + $0x8] sm:$0xff] }
   0x2   :  { %22 = vrot.lane.b32.xlu0 %v17_v0, %s48_s17  ;;  %26 = vrot.lane.b32.xlu1 %v17_v0, %s49_s18  ;;  %v19_v2 = vld [vmem:[%s97_s1] sm:$0xff] }
   0x3   :  { %v20_v3 = vld [vmem:[%s98_s2] sm:$0xff]  ;;  %v30_v5 = vmul.f32 %v19_v2, %v17_v0  ;;  %v31_v10 = vmul.f32 %v19_v2, %v18_v1 }
   0x4   :  { %v21_v4 = vld [vmem:[%s99_s3] sm:$0xff] }
   0x6   :  { %24 = vrot.lane.b32.xlu0 %v18_v1, %s48_s17  ;;  %28 = vrot.lane.b32.xlu1 %v18_v1, %s49_s18 }
  0x74   :  { %v23_v6 = vpop.permute.xlu0 %22  ;;  %v27_v7 = vpop.permute.xlu1 %26 }
  0x75   :  { %v32_v8 = vmul.f32 %v23_v6, %v20_v3  ;;  %v36_v9 = vmul.f32 %v27_v7, %v21_v4 }
  0x77   :  { %v34_v11 = vadd.f32 %v32_v8, %v30_v5 }
  0x78   :  { %v25_v12 = vpop.permute.xlu0 %24  ;;  %v29_v13 = vpop.permute.xlu1 %28 }
  0x79   :  { %v38_v14 = vadd.f32 %v36_v9, %v34_v11  ;;  %v33_v15 = vmul.f32 %v25_v12, %v20_v3  ;;  %v37_v16 = vmul.f32 %v29_v13, %v21_v4 }
  0x7b   :  { %40 = vst [vmem:[%s100_s4] sm:$0xff] %v38_v14  ;;  %v35_v17 = vadd.f32 %v33_v15, %v31_v10 }
  0x7d   :  { %v39_v18 = vadd.f32 %v37_v16, %v35_v17 }
  0x7f   :  { %41 = vst [vmem:[%s100_s4 + $0x8] sm:$0xff] %v39_v18 }

</bundles_post_ra>
